<compile_context>
chip_gen: v7x
topology: tpu7x:2x2x1
jax: 0.10.0
libtpu: 0.0.40
codegen_flags: <defaults>
</compile_context>

<pallas_src>
import functools
import math

import jax
import jax.numpy as jnp
from jax.experimental import pallas as pl
from jax.experimental.pallas import tpu as pltpu


# ---------------------------------------------------------------------------
# Parameter / buffer setup (glue, plain JAX) — mirrors PositionalEncoding.__init__
# ---------------------------------------------------------------------------
def make_positional_encoding_table(max_len: int, d_model: int,
                                   dtype=jnp.float32) -> jax.Array:
    """Builds the (max_len, 1, d_model) sin/cos table, matching the PyTorch buffer."""
    position = jnp.arange(max_len, dtype=jnp.float32)[:, None]                # (max_len, 1)
    div_term = jnp.exp(
        jnp.arange(0, d_model, 2, dtype=jnp.float32) * (-math.log(10000.0) / d_model)
    )                                                                         # (d_model//2,)
    pe = jnp.zeros((max_len, d_model), dtype=jnp.float32)
    pe = pe.at[:, 0::2].set(jnp.sin(position * div_term))
    pe = pe.at[:, 1::2].set(jnp.cos(position * div_term))
    # unsqueeze(0).transpose(0, 1)  ->  (max_len, 1, d_model)
    return pe[:, None, :].astype(dtype)


# ---------------------------------------------------------------------------
# Pallas kernel: y = dropout(x + pe, p)
# ---------------------------------------------------------------------------
def _pe_dropout_kernel(seed_ref, x_ref, pe_ref, o_ref, *,
                       p: float, training: bool, block_rows: int):
    # x_ref: (TS, B, D) VMEM tile; pe_ref: (TS, 1, D) VMEM tile (broadcast over batch).
    y = x_ref[...] + pe_ref[...]

    if training and p > 0.0:
        keep_prob = 1.0 - p
        shape = y.shape
        # Counter-based PRNG: hash (seed, global element index).  Keeps masks
        # independent across seq tiles; no HW PRNG primitives needed.
        row0 = pl.program_id(0) * block_rows
        r = jax.lax.broadcasted_iota(jnp.int32, shape, 0) + row0
        b = jax.lax.broadcasted_iota(jnp.int32, shape, 1)
        c = jax.lax.broadcasted_iota(jnp.int32, shape, 2)
        h = (r.astype(jnp.uint32) * jnp.uint32(0x9E3779B1)
             ^ b.astype(jnp.uint32) * jnp.uint32(0x85EBCA77)
             ^ c.astype(jnp.uint32) * jnp.uint32(0xC2B2AE3D)
             ^ seed_ref[0].astype(jnp.uint32))
        # lowbias32 finalizer
        h = h ^ (h >> 16)
        h = h * jnp.uint32(0x7FEB352D)
        h = h ^ (h >> 15)
        h = h * jnp.uint32(0x846CA68B)
        h = h ^ (h >> 16)
        # 24-bit uniform in [0, 1); compare against keep_prob.
        u = (h >> 8).astype(jnp.float32) * jnp.float32(1.0 / (1 << 24))
        keep = u < jnp.float32(keep_prob)
        scale = jnp.asarray(1.0 / keep_prob, dtype=y.dtype)   # stays bf16 if x is bf16
        y = jnp.where(keep, y * scale, jnp.zeros_like(y))

    o_ref[...] = y.astype(o_ref.dtype)


# ---------------------------------------------------------------------------
# Wrapper
# ---------------------------------------------------------------------------
def positional_encoding_forward(
    x: jax.Array,
    pe: jax.Array,
    seed: jax.Array,
    *,
    p: float = 0.1,
    training: bool = True,
    block_rows: int | None = None,
) -> jax.Array:
    """x: (seq_len, batch, d_model); pe: (max_len, 1, d_model); seed: int32[1]."""
    S, B, D = x.shape
    # Static slice + cast so the in-kernel add stays in x's dtype (bf16 stays bf16).
    pe_slice = pe[:S].astype(x.dtype)  # (S, 1, D)

    if block_rows is None:
        # Size the seq tile so each x/out block is ~2 MiB: big enough to hide
        # the ~0.35 us per-step overhead, small enough that double-buffered
        # x + out + pe blocks (plus mask temporaries) fit scoped VMEM on
        # v5e / v6e / v7x (64 MiB physical on v7x).
        bytes_per_row = B * D * jnp.dtype(x.dtype).itemsize
        target_bytes = 2 * 1024 * 1024
        block_rows = max(1, min(S, target_bytes // max(1, bytes_per_row)))
        if block_rows > 8:
            block_rows -= block_rows % 8
    block_rows = int(min(block_rows, S))

    grid = (pl.cdiv(S, block_rows),)
    kernel = functools.partial(
        _pe_dropout_kernel, p=float(p), training=bool(training), block_rows=block_rows
    )

    return pl.pallas_call(
        kernel,
        out_shape=jax.ShapeDtypeStruct((S, B, D), x.dtype),
        grid_spec=pltpu.PrefetchScalarGridSpec(
            num_scalar_prefetch=1,       # seed lands in SMEM
            grid=grid,
            in_specs=[
                pl.BlockSpec((block_rows, B, D), lambda i, seed_ref: (i, 0, 0)),
                pl.BlockSpec((block_rows, 1, D), lambda i, seed_ref: (i, 0, 0)),
            ],
            out_specs=pl.BlockSpec((block_rows, B, D), lambda i, seed_ref: (i, 0, 0)),
        ),
        compiler_params=pltpu.CompilerParams(
            # Seq tiles are independent -> megacore sharding on v7x, harmless elsewhere.
            dimension_semantics=("parallel",),
            vmem_limit_bytes=32 * 1024 * 1024,
        ),
    )(seed, x, pe_slice)


# ---------------------------------------------------------------------------
# Demo / smoke test
# ---------------------------------------------------------------------------
if __name__ == "__main__":
    d_model = 32
    max_len = 64          # small synthetic max_len (module default is 5000)
    seq_len = 8
    batch = 2
    p_drop = 0.1

    key = jax.random.PRNGKey(0)
    x = jax.random.normal(key, (seq_len, batch, d_model), dtype=jnp.float32)

    pe = make_positional_encoding_table(max_len, d_model)
    seed = jnp.array([1234], dtype=jnp.int32)

    # Force a multi-tile grid (2 seq tiles of 4 rows) so the tiling path,
    # per-tile index maps, and per-tile PRNG offsets are exercised.
    out_train = positional_encoding_forward(
        x, pe, seed, p=p_drop, training=True, block_rows=4)
    out_train = jax.block_until_ready(out_train)

    out_eval = positional_encoding_forward(
        x, pe, seed, p=p_drop, training=False, block_rows=4)
    out_eval = jax.block_until_ready(out_eval)

    ref = x + pe[:seq_len]
    assert out_train.shape == (seq_len, batch, d_model)
    assert jnp.allclose(out_eval, ref, atol=1e-6), "eval-mode mismatch"

    # Training mode: every element is either dropped (0) or (x+pe)/keep_prob.
    keep_prob = 1.0 - p_drop
    recon = out_train * keep_prob
    ok = jnp.isclose(recon, ref, atol=1e-5, rtol=1e-5) | (out_train == 0.0)
    assert bool(jnp.all(ok)), "training-mode values are not {0, (x+pe)/keep_prob}"

    print("KERNEL_OK")
</pallas_src>

<mosaic_0001>
module attributes {stable_mosaic.version = 11 : i64} {
  func.func @_pe_dropout_kernel(%arg0: i32, %arg1: memref<1xi32, #tpu.memory_space<smem>>, %arg2: memref<4x2x32xf32, #tpu.memory_space<vmem>>, %arg3: memref<4x1x32xf32, #tpu.memory_space<vmem>>, %arg4: memref<4x2x32xf32, #tpu.memory_space<vmem>>) attributes {dimension_semantics = [#tpu.dimension_semantics<parallel>], iteration_bounds = array<i64: 2>, scalar_prefetch = 1 : i64, scratch_operands = 0 : i64, tpu.core_type = #tpu.core_type<tc>, window_params = [{transform_indices = @transform_0, window_bounds = array<i64: 4, 2, 32>}, {transform_indices = @transform_1, window_bounds = array<i64: 4, 1, 32>}, {transform_indices = @transform_2, window_bounds = array<i64: 4, 2, 32>}]} {
    %c0 = arith.constant 0 : index
    %c0_0 = arith.constant 0 : index
    %c0_1 = arith.constant 0 : index
    %0 = vector.load %arg2[%c0, %c0_0, %c0_1] : memref<4x2x32xf32, #tpu.memory_space<vmem>>, vector<4x2x32xf32>
    %c0_2 = arith.constant 0 : index
    %c0_3 = arith.constant 0 : index
    %c0_4 = arith.constant 0 : index
    %1 = vector.load %arg3[%c0_2, %c0_3, %c0_4] : memref<4x1x32xf32, #tpu.memory_space<vmem>>, vector<4x1x32xf32>
    %2 = vector.broadcast %1 : vector<4x1x32xf32> to vector<4x2x32xf32>
    %3 = arith.addf %0, %2 : vector<4x2x32xf32>
    %c4_i32 = arith.constant 4 : i32
    %4 = arith.muli %arg0, %c4_i32 : i32
    %5 = tpu.iota {dimensions = array<i32: 0>} : vector<4x2x32xi32>
    %6 = vector.broadcast %4 : i32 to vector<4x2x32xi32>
    %7 = arith.addi %5, %6 : vector<4x2x32xi32>
    %8 = tpu.iota {dimensions = array<i32: 1>} : vector<4x2x32xi32>
    %9 = tpu.iota {dimensions = array<i32: 2>} : vector<4x2x32xi32>
    %c-1640531535_i32 = arith.constant -1640531535 : i32
    %10 = vector.broadcast %c-1640531535_i32 : i32 to vector<4x2x32xi32>
    %11 = arith.muli %7, %10 : vector<4x2x32xi32>
    %c-2048144777_i32 = arith.constant -2048144777 : i32
    %12 = vector.broadcast %c-2048144777_i32 : i32 to vector<4x2x32xi32>
    %13 = arith.muli %8, %12 : vector<4x2x32xi32>
    %14 = arith.xori %11, %13 : vector<4x2x32xi32>
    %c-1028477379_i32 = arith.constant -1028477379 : i32
    %15 = vector.broadcast %c-1028477379_i32 : i32 to vector<4x2x32xi32>
    %16 = arith.muli %9, %15 : vector<4x2x32xi32>
    %17 = arith.xori %14, %16 : vector<4x2x32xi32>
    %c0_5 = arith.constant 0 : index
    %18 = memref.load %arg1[%c0_5] : memref<1xi32, #tpu.memory_space<smem>>
    %19 = vector.broadcast %18 : i32 to vector<4x2x32xi32>
    %20 = arith.xori %17, %19 : vector<4x2x32xi32>
    %c16_i32 = arith.constant 16 : i32
    %21 = vector.broadcast %c16_i32 : i32 to vector<4x2x32xi32>
    %22 = arith.shrui %20, %21 : vector<4x2x32xi32>
    %23 = arith.xori %20, %22 : vector<4x2x32xi32>
    %c2146121005_i32 = arith.constant 2146121005 : i32
    %24 = vector.broadcast %c2146121005_i32 : i32 to vector<4x2x32xi32>
    %25 = arith.muli %23, %24 : vector<4x2x32xi32>
    %c15_i32 = arith.constant 15 : i32
    %26 = vector.broadcast %c15_i32 : i32 to vector<4x2x32xi32>
    %27 = arith.shrui %25, %26 : vector<4x2x32xi32>
    %28 = arith.xori %25, %27 : vector<4x2x32xi32>
    %c-2073254261_i32 = arith.constant -2073254261 : i32
    %29 = vector.broadcast %c-2073254261_i32 : i32 to vector<4x2x32xi32>
    %30 = arith.muli %28, %29 : vector<4x2x32xi32>
    %c16_i32_6 = arith.constant 16 : i32
    %31 = vector.broadcast %c16_i32_6 : i32 to vector<4x2x32xi32>
    %32 = arith.shrui %30, %31 : vector<4x2x32xi32>
    %33 = arith.xori %30, %32 : vector<4x2x32xi32>
    %c8_i32 = arith.constant 8 : i32
    %34 = vector.broadcast %c8_i32 : i32 to vector<4x2x32xi32>
    %35 = arith.shrui %33, %34 : vector<4x2x32xi32>
    %36 = arith.uitofp %35 : vector<4x2x32xi32> to vector<4x2x32xf32>
    %cst = arith.constant 5.96046448E-8 : f32
    %37 = vector.broadcast %cst : f32 to vector<4x2x32xf32>
    %38 = arith.mulf %36, %37 : vector<4x2x32xf32>
    %cst_7 = arith.constant 0.899999976 : f32
    %39 = vector.broadcast %cst_7 : f32 to vector<4x2x32xf32>
    %40 = arith.cmpf olt, %38, %39 : vector<4x2x32xf32>
    %cst_8 = arith.constant 1.11111116 : f32
    %41 = vector.broadcast %cst_8 : f32 to vector<4x2x32xf32>
    %42 = arith.mulf %3, %41 : vector<4x2x32xf32>
    %cst_9 = arith.constant 0.000000e+00 : f32
    %43 = vector.broadcast %cst_9 : f32 to vector<4x2x32xf32>
    %44 = arith.select %40, %42, %43 : vector<4x2x32xi1>, vector<4x2x32xf32>
    %c0_10 = arith.constant 0 : index
    %c0_11 = arith.constant 0 : index
    %c0_12 = arith.constant 0 : index
    %45 = vector.load %arg4[%c0_10, %c0_11, %c0_12] : memref<4x2x32xf32, #tpu.memory_space<vmem>>, vector<4x2x32xf32>
    tpu.vector_store %arg4[%c0_10, %c0_11, %c0_12], %44 {strides = array<i32>} : memref<4x2x32xf32, #tpu.memory_space<vmem>>, vector<4x2x32xf32>,
    return
  }
  func.func @transform_0(%arg0: i32, %arg1: memref<1xi32, #tpu.memory_space<smem>>) -> (i32, i32, i32) {
    %c0_i32 = arith.constant 0 : i32
    %c0_i32_0 = arith.constant 0 : i32
    %c0_i32_1 = arith.constant 0 : i32
    return %arg0, %c0_i32, %c0_i32_0 : i32, i32, i32
  }
  func.func @transform_1(%arg0: i32, %arg1: memref<1xi32, #tpu.memory_space<smem>>) -> (i32, i32, i32) {
    %c0_i32 = arith.constant 0 : i32
    %c0_i32_0 = arith.constant 0 : i32
    %c0_i32_1 = arith.constant 0 : i32
    return %arg0, %c0_i32, %c0_i32_0 : i32, i32, i32
  }
  func.func @transform_2(%arg0: i32, %arg1: memref<1xi32, #tpu.memory_space<smem>>) -> (i32, i32, i32) {
    %c0_i32 = arith.constant 0 : i32
    %c0_i32_0 = arith.constant 0 : i32
    %c0_i32_1 = arith.constant 0 : i32
    return %arg0, %c0_i32, %c0_i32_0 : i32, i32, i32
  }
}

</mosaic_0001>

<bundles_post_ra>
// kernel: tpu_custom_call.1
= control target key start
LH: loop header
LB: loop body
LE: loop exit
PB: predicated region body
PF: predicated region fallthrough
CT: control target
= control target key end

     0   :  { %s943_s0 = inlined_call_operand.<no memory space> [shape: s32[1], index: 0, kind: input, shape index: {}]   ;;  %s944_s1 = inlined_call_operand.hbm [shape: f32[8,2,32], index: 1, kind: input, shape index: {}]   ;;  %s945_s2 = inlined_call_operand.hbm [shape: f32[8,1,32], index: 2, kind: input, shape index: {}]   ;;  %s946_s3 = inlined_call_operand.hbm [shape: f32[8,2,32], index: 3, kind: output, shape index: {}]  }
   0x1   :  { %8 = sst [smem:[#allocation3]] %s943_s0 }
   0x2   :  { %9 = vsyncpa [#allocation5], 0 }
   0x3   :  { %11 = vsyncpa [#allocation5 + $0x1], 0 }
   0x4   :  { %12 = vsyncpa [#allocation8], 0 }
   0x5   :  { %14 = vsyncpa [#allocation8 + $0x1], 0 }
   0x6   :  { %15 = vsyncpa [#allocation6], 0 }
   0x7   :  { %17 = vsyncpa [#allocation6 + $0x1], 0  ;;  %s710_s14 = smov 0   ;;  %s712_s15 = smov 0  }
   0x8   :  { %s714_s16 = smov 0   ;;  %s716_s17 = smov 0  }
   0x9 LB: > { %s731_s0 = sadd.s32 4294967295, %s676_s17   ;;  %s463_s18 = sadd.s32 4294967294, %s676_s17   ;;  %s676_s17 = sphi %s716_s17, %s962_s17   ;;  %s672_s16 = sphi %s714_s16, %s961_s16   ;;  %s668_s15 = sphi %s712_s15, %s960_s15   ;;  %s664_s14 = sphi %s710_s14, %s959_s14  }
   0xa   : > { %s735_s19 = sadd.s32 1, %s676_s17   ;;  %s30_s20 = sadd.s32 1, %s672_s16 }
   0xb   : > { %s27_s21 = ssub.s32 %s676_s17, %s735_s19  ;;  %p37_p0 = scmp.ne.s32.totalorder %s672_s16, %s668_s15 }
   0xc   : > { %p28_p1 = scmp.eq.s32.totalorder %s27_s21, 0  ;;  %p38_p2 = scmp.eq.s32.totalorder %s676_s17, 0 }
   0xd   : > { %p43_p3 = scmp.ne.s32.totalorder %s668_s15, %s664_s14  ;;  %p44_p4 = scmp.eq.s32.totalorder %s731_s0, 0 }
   0xe   : > { %s747_s22 = scalar_select %p28_p1, %s672_s16, %s30_s20  }
   0xf   : > { %p749_p5 = por %p38_p2, %p37_p0  ;;  %p753_p6 = por %p44_p4, %p43_p3 }
  0x10   : > { %p93_p7 = scmp.eq.s32.totalorder %s731_s0, 1  ;;  %p99_p8 = scmp.eq.s32.totalorder %s463_s18, 1 }
  0x11   : > { %s950_s24 = scalar_select %p753_p6, 1, 0 }
  0x12   : > { %p506_p10 = scmp.lt.s32.totalorder %s676_s17, 2  ;;  %p760_p11 = por %p93_p7, %p37_p0 }
  0x13   : > { %p764_p12 = por %p99_p8, %p43_p3  ;;  %s769_s27 = sand.u32 1, %s672_s16  }
  0x14   : > { %s951_s25 = scalar_select %p760_p11, 1, 0 }
  0x15   : > { %s952_s26 = scalar_select %p764_p12, 1, 0 }
  0x16   : > { %s486_s28 = sshll.u32 %s676_s17, 7  ;;  %s466_s29 = sshll.u32 %s769_s27, 3 }
  0x17   : > { %s776_s5 = scalar_lea.hbm %s944_s1, %s486_s28  ;;  %s123_s6 = scalar_lea.vmem [#allocation4], %s466_s29 }
  0x18   : > { %s130_s7 = sshll.u32 %s123_s6, 4  ;;  %p780_p13 = pnand %p506_p10, %p749_p5  ;;  %s784_s7 = int_to_ptr.vmem [resolvable:$true] %s130_s7 }
  0x19   : > { %s120_s9 = scalar_lea.sflag [#allocation5], %s769_s27  ;;  %s546_s10 = scalar_lea.hbm %s776_s5, 128 }
  0x1a   : > { %p547_p0 = scmp.ne.s32.totalorder %s776_s5, %s546_s10  ;;  %p548_p1 = pneg %p780_p13 }
  0x1b   : > { %s551_s13 = scalar_lea.hbm %s944_s1, 256  ;;  %p552_p4 = scmp.lt.u32.totalorder %s776_s5, %s944_s1 }
  0x1c   : > { %p549_p2 = pnand %p548_p1, %p547_p0  ;;  %p553_p5 = scmp.lt.u32.totalorder %s551_s13, %s546_s10 }
  0x1d   : > { %p555_p8 = scmp.lt.u32.totalorder %s546_s10, %s776_s5 }
  0x1e   : > { %p550_p3 = pneg %p549_p2  ;;  %p554_p7 = por %p553_p5, %p552_p4 }
  0x20   : > { %p556_p10 = por %p555_p8, %p554_p7 }
  0x22   : > { %p557_p9 = pnand %p556_p10, %p550_p3 }
  0x24   : > { %560 = shalt.err (!%p557_p9)
}
  0x25   : > { %s561_s21 = scalar_lea.vmem %s784_s7, 128  ;;  %s678_s23 = smov [#allocation4]  }
  0x26   : > { %p562_p0 = scmp.ne.s32.totalorder %s784_s7, %s561_s21  ;;  %s566_s28 = sshll.u32 %s678_s23, 4  ;;  %s567_s28 = int_to_ptr.vmem [resolvable:$false] %s566_s28 }
  0x27   : > { %s568_s29 = scalar_lea.vmem %s567_s28, 256  ;;  %p569_p11 = scmp.lt.s32.totalorder %s784_s7, %s567_s28 }
  0x28   : > { %p564_p2 = pnand %p562_p0, %p548_p1  ;;  %p570_p4 = scmp.lt.s32.totalorder %s568_s29, %s561_s21 }
  0x2a   : > { %p565_p12 = pneg %p564_p2  ;;  %p571_p5 = por %p570_p4, %p569_p11 }
  0x2c   : > { %p572_p7 = pnand %p571_p5, %p565_p12 }
  0x2e   : > { %575 = shalt.err (!%p572_p7)
}
  0x2f   : > { %s679_s30 = smov 32   ;;  %s680_s4 = smov 2  }
  0x30   : > { %498 = dma.hbm_to_vmem [thread:$0]  (!%p780_p13), %s776_s5, 128, %s784_s7, %s120_s9, %s679_s30, %s679_s30, %s680_s4  }
  0x31   : > { %p472_p9 = scmp.ge.s32.totalorder %s676_s17, 1  ;;  %p159_p3 = scmp.lt.s32.totalorder %s676_s17, 3 }
  0x32   : > { %s469_s6 = sshll.u32 %s769_s27, 2  ;;  %s487_s11 = sshll.u32 %s676_s17, 6 }
  0x33   : > { %p817_p11 = pnand %p472_p9, %p159_p3  ;;  %s144_s12 = scalar_lea.vmem [#allocation7], %s469_s6 }
  0x34   : > { %s151_s13 = sshll.u32 %s144_s12, 4  ;;  %s825_s21 = scalar_lea.hbm %s945_s2, %s487_s11  ;;  %s827_s13 = int_to_ptr.vmem [resolvable:$true] %s151_s13 }
  0x35   : > { %s141_s5 = scalar_lea.sflag [#allocation8], %s769_s27  ;;  %s576_s7 = scalar_lea.hbm %s825_s21, 64 }
  0x36   : > { %p577_p12 = scmp.ne.s32.totalorder %s825_s21, %s576_s7  ;;  %s581_s28 = scalar_lea.hbm %s945_s2, 128 }
  0x37   : > { %p582_p0 = scmp.lt.u32.totalorder %s825_s21, %s945_s2  ;;  %p583_p2 = scmp.lt.u32.totalorder %s581_s28, %s576_s7 }
  0x38   : > { %p579_p8 = pnand %p577_p12, %p548_p1  ;;  %p585_p5 = scmp.lt.u32.totalorder %s576_s7, %s825_s21 }
  0x39   : > { %p584_p4 = por %p583_p2, %p582_p0 }
  0x3a   : > { %p580_p10 = pneg %p579_p8 }
  0x3b   : > { %p586_p7 = por %p585_p5, %p584_p4 }
  0x3d   : > { %p587_p9 = pnand %p586_p7, %p580_p10 }
  0x3f   : > { %590 = shalt.err (!%p587_p9)
}
  0x40   : > { %s591_s4 = scalar_lea.vmem %s827_s13, 64  ;;  %s681_s6 = smov [#allocation7]  }
  0x41   : > { %p592_p3 = scmp.ne.s32.totalorder %s827_s13, %s591_s4  ;;  %s596_s11 = sshll.u32 %s681_s6, 4  ;;  %s597_s11 = int_to_ptr.vmem [resolvable:$false] %s596_s11 }
  0x42   : > { %s598_s12 = scalar_lea.vmem %s597_s11, 128  ;;  %p599_p6 = scmp.lt.s32.totalorder %s827_s13, %s597_s11 }
  0x43   : > { %p594_p12 = pnand %p592_p3, %p548_p1  ;;  %p600_p0 = scmp.lt.s32.totalorder %s598_s12, %s591_s4 }
  0x45   : > { %p595_p8 = pneg %p594_p12  ;;  %p601_p2 = por %p600_p0, %p599_p6 }
  0x47   : > { %p602_p4 = pnand %p601_p2, %p595_p8 }
  0x49   : > { %605 = shalt.err (!%p602_p4)
}
  0x4a   : > { %s682_s18 = smov 16   ;;  %s683_s20 = smov 1  }
  0x4b   : > { %501 = dma.hbm_to_vmem [thread:$0]  (!%p780_p13), %s825_s21, 64, %s827_s13, %s141_s5, %s682_s18, %s682_s18, %s683_s20  }
  0x4c   : > { %163 = sbr.rel (%p817_p11) target bundleno = 146 (0x92), region = 28  ;;  %s858_s7 = sand.u32 (!%p817_p11), 1, %s668_s15  }
  0x4d   : > { %s473_s9 = sshll.u32 (!%p817_p11), %s858_s7, 3  ;;  %s166_s23 = scalar_lea.sflag (!%p817_p11), [#allocation5], %s858_s7 }
  0x4e   : > { %s864_s28 = scalar_lea.vmem (!%p817_p11), [#allocation4], %s473_s9  ;;  %p955_p6 = scmp.ne.s32.totalorder (!%p817_p11), %s950_s24, 0 }
  0x53   : > { %651 = dma.done.wait (%p955_p6), %s166_s23, 128  }
  0x54   : > { %653 = vsyncadd (%p955_p6), %s166_s23, 4294967168  ;;  %s474_s27 = sshll.u32 %s858_s7, 2  ;;  %s175_s8 = scalar_lea.sflag [#allocation8], %s858_s7 }
  0x55   : > { %s872_s10 = scalar_lea.vmem [#allocation7], %s474_s27 }
  0x56   : > { %655 = dma.done.wait (%p955_p6), %s175_s8, 64  }
  0x57   : > { %657 = vsyncadd (%p955_p6), %s175_s8, 4294967232  ;;  %s480_s13 = sshll.u32 %s731_s0, 2  ;;  %v248_v0 = vlaneseq  ;;  %s266_s21 = sld [smem:[#allocation3]]  ;;  %v207_v53 = vld [vmem:[%s864_s28] sm:$0x3]  ;;  %vm348_vm0 = vcmask 254976  }
  0x58   : > { %v244_v1 = vstv %s480_s13  ;;  %v476_v54 = vld [vmem:[%s872_s10] ss:$0 sm:$0xff]  ;;  %v208_v57 = vld [vmem:[%s864_s28 + $0x2] sm:$0x3]  ;;  %v477_v58 = vld [vmem:[%s872_s10 + $0x1] ss:$0 sm:$0xff] }
  0x59   : > { %v249_v2 = vshrl.u32 %v248_v0, 7  ;;  %v251_v3 = vand.u32 127, %v248_v0  ;;  %v252_v4 = vmul.u32 2654435761, %v244_v1  ;;  %v245_v5 = vadd.s32 1, %v244_v1  ;;  %s203_s24 = scalar_lea.vmem [#allocation9], %s473_s9 }
  0x5a   : > { %v246_v6 = vadd.s32 2, %v244_v1  ;;  %v247_v7 = vadd.s32 3, %v244_v1  ;;  %v239_v63 = vadd.f32 %v476_v54, %v207_v53  ;;  %s367_s5 = sshll.u32 %s203_s24, 4  ;;  %s488_s29 = sshll.u32 %s731_s0, 7  ;;  %s890_s5 = int_to_ptr.vmem [resolvable:$true] %s367_s5 }
  0x5b   : > { %v256_v8 = vmul.u32 2246822519, %v249_v2  ;;  %v261_v9 = vmul.u32 3266489917, %v251_v3  ;;  %s896_s0 = scalar_lea.hbm %s946_s3, %s488_s29  ;;  %s354_s6 = scalar_lea.sflag [#allocation6], %s858_s7 }
  0x5c   : > { %v253_v10 = vmul.u32 2654435761, %v245_v5  ;;  %v254_v11 = vmul.u32 2654435761, %v246_v6  ;;  %v209_v5 = vld [vmem:[%s864_s28 + $0x4] sm:$0x3] }
  0x5d   : > { %v257_v12 = vxor.u32 %v256_v8, %v252_v4  ;;  %v255_v13 = vmul.u32 2654435761, %v247_v7  ;;  %v267_v14 = vstv %s266_s21  ;;  %v240_v4 = vadd.f32 %v477_v58, %v208_v57  ;;  %s606_s11 = scalar_lea.vmem %s890_s5, 128  ;;  %p956_p1 = scmp.ne.s32.totalorder %s951_s25, 0 }
  0x5e   : > { %v258_v15 = vxor.u32 %v256_v8, %v253_v10  ;;  %v259_v16 = vxor.u32 %v256_v8, %v254_v11  ;;  %p607_p13 = scmp.ne.s32.totalorder %s890_s5, %s606_s11  ;;  %s684_s12 = smov [#allocation9]  }
  0x5f   : > { %v262_v17 = vxor.u32 %v261_v9, %v257_v12  ;;  %v260_v18 = vxor.u32 %v256_v8, %v255_v13  ;;  %s610_s18 = sshll.u32 %s684_s12, 4  ;;  %s611_s18 = int_to_ptr.vmem [resolvable:$false] %s610_s18 }
  0x60   : > { %v263_v19 = vxor.u32 %v261_v9, %v258_v15  ;;  %v264_v20 = vxor.u32 %v261_v9, %v259_v16  ;;  %v479_v15 = vld [vmem:[%s872_s10 + $0x3] ss:$0 sm:$0xff]  ;;  %p608_p11 = pnand %p607_p13, %p956_p1  ;;  %s612_s20 = scalar_lea.vmem %s611_s18, 256 }
  0x61   : > { %v268_v21 = vxor.u32 %v267_v14, %v262_v17  ;;  %v265_v22 = vxor.u32 %v261_v9, %v260_v18  ;;  %v478_v9 = vld [vmem:[%s872_s10 + $0x2] ss:$0 sm:$0xff]  ;;  %p613_p5 = scmp.lt.s32.totalorder %s890_s5, %s611_s18  ;;  %p614_p7 = scmp.lt.s32.totalorder %s612_s20, %s606_s11 }
  0x62   : > { %v269_v23 = vxor.u32 %v267_v14, %v263_v19  ;;  %v270_v24 = vxor.u32 %v267_v14, %v264_v20  ;;  %p609_p10 = pneg %p608_p11 }
  0x63   : > { %v272_v25 = vshrl.u32 %v268_v21, 16  ;;  %v271_v26 = vxor.u32 %v267_v14, %v265_v22  ;;  %v210_v14 = vld [vmem:[%s864_s28 + $0x6] sm:$0x3]  ;;  %p615_p9 = por %p614_p7, %p613_p5 }
  0x64   : > { %v273_v27 = vshrl.u32 %v269_v23, 16  ;;  %v274_v28 = vshrl.u32 %v270_v24, 16 }
  0x65   : > { %v276_v29 = vxor.u32 %v272_v25, %v268_v21  ;;  %v275_v30 = vshrl.u32 %v271_v26, 16  ;;  %p616_p3 = pnand %p615_p9, %p609_p10 }
  0x66   : > { %v277_v31 = vxor.u32 %v273_v27, %v269_v23  ;;  %v278_v32 = vxor.u32 %v274_v28, %v270_v24  ;;  %v241_v23 = vadd.f32 %v478_v9, %v209_v5  ;;  %v242_v28 = vadd.f32 %v479_v15, %v210_v14 }
  0x67   : > { %v280_v33 = vmul.u32 2146121005, %v276_v29  ;;  %v279_v34 = vxor.u32 %v275_v30, %v271_v26 }
  0x68   : > { %v281_v35 = vmul.u32 2146121005, %v277_v31  ;;  %v282_v36 = vmul.u32 2146121005, %v278_v32  ;;  %v340_v31 = vmul.f32 1.1111112, %v239_v63 }
  0x69   : > { %v284_v37 = vshrl.u32 %v280_v33, 15  ;;  %v283_v38 = vmul.u32 2146121005, %v279_v34 }
  0x6a   : > { %v285_v39 = vshrl.u32 %v281_v35, 15  ;;  %v286_v40 = vshrl.u32 %v282_v36, 15 }
  0x6b   : > { %v288_v41 = vxor.u32 %v284_v37, %v280_v33  ;;  %v287_v42 = vshrl.u32 %v283_v38, 15 }
  0x6c   : > { %v289_v43 = vxor.u32 %v285_v39, %v281_v35  ;;  %v290_v44 = vxor.u32 %v286_v40, %v282_v36  ;;  %v341_v35 = vmul.f32 1.1111112, %v240_v4  ;;  %v342_v36 = vmul.f32 1.1111112, %v241_v23 }
  0x6d   : > { %v292_v45 = vmul.u32 2221713035, %v288_v41  ;;  %v291_v46 = vxor.u32 %v287_v42, %v283_v38  ;;  %v343_v40 = vmul.f32 1.1111112, %v242_v28 }
  0x6e   : > { %v293_v47 = vmul.u32 2221713035, %v289_v43  ;;  %v294_v48 = vmul.u32 2221713035, %v290_v44 }
  0x6f   : > { %v296_v49 = vshrl.u32 %v292_v45, 16  ;;  %v295_v50 = vmul.u32 2221713035, %v291_v46 }
  0x70   : > { %v297_v51 = vshrl.u32 %v293_v47, 16  ;;  %v298_v52 = vshrl.u32 %v294_v48, 16 }
  0x71   : > { %v300_v55 = vxor.u32 %v296_v49, %v292_v45  ;;  %v299_v56 = vshrl.u32 %v295_v50, 16 }
  0x72   : > { %v301_v59 = vxor.u32 %v297_v51, %v293_v47  ;;  %v302_v60 = vxor.u32 %v298_v52, %v294_v48 }
  0x73   : > { %v304_v61 = vshrl.u32 %v300_v55, 8  ;;  %v303_v62 = vxor.u32 %v299_v56, %v295_v50 }
  0x74   : > { %v305_v0 = vshrl.u32 %v301_v59, 8  ;;  %v306_v1 = vshrl.u32 %v302_v60, 8 }
  0x75   : > { %v308_v2 = vshrl.u32 %v304_v61, 16  ;;  %v309_v3 = vand.u32 65535, %v304_v61  ;;  %v307_v6 = vshrl.u32 %v303_v62, 8 }
  0x76   : > { %v314_v7 = vshrl.u32 %v305_v0, 16  ;;  %v315_v8 = vand.u32 65535, %v305_v0  ;;  %v320_v10 = vshrl.u32 %v306_v1, 16  ;;  %v321_v11 = vand.u32 65535, %v306_v1 }
  0x77   : > { %v310_v12 = vcvt.s32.f32 %v308_v2  ;;  %v312_v13 = vcvt.s32.f32 %v309_v3  ;;  %v326_v16 = vshrl.u32 %v307_v6, 16  ;;  %v327_v17 = vand.u32 65535, %v307_v6 }
  0x78   : > { %v316_v18 = vcvt.s32.f32 %v314_v7  ;;  %v318_v19 = vcvt.s32.f32 %v315_v8  ;;  %v322_v20 = vcvt.s32.f32 %v320_v10  ;;  %v324_v21 = vcvt.s32.f32 %v321_v11 }
  0x79   : > { %v311_v22 = vmul.f32 65536.0, %v310_v12  ;;  %v328_v24 = vcvt.s32.f32 %v326_v16  ;;  %v330_v25 = vcvt.s32.f32 %v327_v17 }
  0x7a   : > { %v317_v26 = vmul.f32 65536.0, %v316_v18  ;;  %v323_v27 = vmul.f32 65536.0, %v322_v20 }
  0x7b   : > { %v313_v29 = vadd.f32 %v312_v13, %v311_v22  ;;  %v329_v30 = vmul.f32 65536.0, %v328_v24 }
  0x7c   : > { %v319_v32 = vadd.f32 %v318_v19, %v317_v26  ;;  %v325_v33 = vadd.f32 %v324_v21, %v323_v27 }
  0x7d   : > { %v332_v34 = vmul.f32 5.9604645e-08, %v313_v29  ;;  %v331_v37 = vadd.f32 %v330_v25, %v329_v30 }
  0x7e   : > { %v333_v38 = vmul.f32 5.9604645e-08, %v319_v32  ;;  %v334_v39 = vmul.f32 5.9604645e-08, %v325_v33 }
  0x7f   : > { %vm336_vm1 = vcmp.lt.f32.partialorder %v332_v34, 0.9  ;;  %v335_v41 = vmul.f32 5.9604645e-08, %v331_v37 }
  0x80   : > { %v344_v42 = vsel %vm336_vm1, %v340_v31, 0.0  ;;  %vm337_vm2 = vcmp.lt.f32.partialorder %v333_v38, 0.9  ;;  %vm338_vm3 = vcmp.lt.f32.partialorder %v334_v39, 0.9 }
  0x81   : > { %349 = vst.msk [vmem:[%s203_s24] sm:$0x3] %vm348_vm0, %v344_v42  ;;  %v345_v43 = vsel %vm337_vm2, %v341_v35, 0.0  ;;  %v346_v44 = vsel %vm338_vm3, %v342_v36, 0.0  ;;  %vm339_vm4 = vcmp.lt.f32.partialorder %v335_v41, 0.9 }
  0x82   : > { %350 = vst.msk [vmem:[%s203_s24 + $0x2] sm:$0x3] %vm348_vm0, %v345_v43  ;;  %351 = vst.msk [vmem:[%s203_s24 + $0x4] sm:$0x3] %vm348_vm0, %v346_v44  ;;  %v347_v45 = vsel %vm339_vm4, %v343_v40, 0.0 }
  0x83   : > { %352 = vst.msk [vmem:[%s203_s24 + $0x6] sm:$0x3] %vm348_vm0, %v347_v45 }
  0x84   : > { %619 = shalt.err (!%p616_p3)
}
  0x85   : > { %s620_s9 = scalar_lea.hbm %s896_s0, 128  ;;  %s624_s27 = scalar_lea.hbm %s946_s3, 256 }
  0x86   : > { %p621_p12 = scmp.ne.s32.totalorder %s896_s0, %s620_s9  ;;  %p625_p2 = scmp.lt.u32.totalorder %s896_s0, %s946_s3 }
  0x87   : > { %p626_p4 = scmp.lt.u32.totalorder %s624_s27, %s620_s9  ;;  %p628_p13 = scmp.lt.u32.totalorder %s620_s9, %s896_s0 }
  0x88   : > { %p622_p8 = pnand %p621_p12, %p956_p1 }
  0x89   : > { %p627_p6 = por %p626_p4, %p625_p2 }
  0x8a   : > { %p623_p0 = pneg %p622_p8 }
  0x8b   : > { %p629_p11 = por %p628_p13, %p627_p6 }
  0x8d   : > { %p630_p10 = pnand %p629_p11, %p623_p0 }
  0x8f   : > { %633 = shalt.err (!%p630_p10)
}
  0x90   : > { %s685_s13 = smov 32   ;;  %s686_s21 = smov 2  }
  0x91   : > { %493 = dma.vmem_to_hbm [thread:$0]  (%p956_p1), %s890_s5, 128, %s896_s0, %s354_s6, %s685_s13, %s685_s13, %s686_s21  }
  0x92 PF: > { %s382_s24 = sand.u32 1, %s664_s14   ;;  %p957_p5 = scmp.ne.s32.totalorder %s952_s26, 0 }
  0x93   : > { %p958_p7 = scmp.ge.s32.totalorder %s676_s17, 2  ;;  %s383_s29 = scalar_lea.sflag [#allocation6], %s382_s24 }
  0x95   : > { %p503_p9 = pnand %p958_p7, %p957_p5 }
  0x97   : > { %659 = dma.done.wait (!%p503_p9), %s383_s29, 128  }
  0x98   : > { %661 = vsyncadd (!%p503_p9), %s383_s29, 4294967168  ;;  %p20_p3 = scmp.ge.s32.totalorder %s735_s19, 4   ;;  %s959_s14 = smov %s668_s15 }
  0x99   : > { %s960_s15 = smov %s672_s16  ;;  %s961_s16 = smov %s747_s22 }
  0x9a   : > { %s962_s17 = smov %s735_s19  ;;  %22 = sbr.rel (!%p20_p3) target bundleno = 9 (0x9), region = 86 }
  0xa1   :  { %388 = vsyncpa [#allocation5], 1 }
  0xa2   :  { %390 = vsyncpa [#allocation5 + $0x1], 1 }
  0xa3   :  { %391 = vsyncpa [#allocation8], 1 }
  0xa4   :  { %393 = vsyncpa [#allocation8 + $0x1], 1 }
  0xa5   :  { %394 = vsyncpa [#allocation6], 1 }
  0xa6   :  { %396 = vsyncpa [#allocation6 + $0x1], 1 }

</bundles_post_ra>
